<compile_context>
chip_gen: v7x
topology: tpu7x:2x2x1
jax: 0.10.0
libtpu: 0.0.40
codegen_flags: <defaults>
</compile_context>

<pallas_src>
from functools import lru_cache, partial

import jax
import jax.numpy as jnp
from jax.experimental import pallas as pl
from jax.experimental.pallas import tpu as pltpu


# -----------------------------------------------------------------------------
# Kernel: fused 3-layer MLP, feature-major (activations are [features, TB]).
# -----------------------------------------------------------------------------
def _mlp_kernel(x_ref, w1_ref, b1_ref, w2_ref, b2_ref, w3_ref, b3_ref, o_ref):
    f32 = jnp.float32

    # ---- layer 1: single K=Dx matmul on the concatenated [Dx, TB] tile.
    h = jnp.dot(w1_ref[...], x_ref[...], preferred_element_type=f32)   # [H1, TB]
    h = jnp.maximum(h + b1_ref[...], 0.0)

    # ---- layer 2
    h = jnp.dot(w2_ref[...], h, preferred_element_type=f32)            # [H2, TB]
    h = jnp.maximum(h + b2_ref[...], 0.0)

    # ---- layer 3 (reward head), feature-major output -> lane-dense store.
    if w3_ref.shape[1] == 1:
        # reward_dim == 1: VPU multiply + sublane reduce, skip an M=1 MXU pass.
        y = jnp.sum(h * w3_ref[...], axis=0, keepdims=True)            # [1, TB]
    else:
        y = jax.lax.dot_general(w3_ref[...], h, (((0,), (0,)), ((), ())),
                                preferred_element_type=f32)            # [R, TB]
    o_ref[...] = (y + b3_ref[...]).astype(o_ref.dtype)


# -----------------------------------------------------------------------------
# Helpers
# -----------------------------------------------------------------------------
def _round_up(x, m):
    return ((x + m - 1) // m) * m


@lru_cache(maxsize=1)
def _vmem_capacity_bytes():
    """Physical VMEM of the current chip; conservative fallback = v7x per-core."""
    try:
        return int(pltpu.get_tpu_info().vmem_capacity_bytes)
    except Exception:
        return 64 << 20


# -----------------------------------------------------------------------------
# Forward wrapper matching RewardPredictor.forward semantics.
# -----------------------------------------------------------------------------
@partial(jax.jit, static_argnames=("block_b",))
def reward_predictor_forward(observation, action, task, params, *, block_b=32768):
    """observation [B, obs_dim], action [B, act_dim], task [B] or [B, task_dim].
    Returns [B, reward_dim] float32 (same math as the fp32 PyTorch module)."""
    if task.ndim != observation.ndim:
        task = task[..., None]                     # torch: task.unsqueeze(-1)

    # TODO(synk): kernel is specialized to exactly two hidden layers (the
    # module's typical hidden_sizes=[32, 32]); guard rather than silently
    # computing the wrong function for deeper stacks.
    expected = {"w1", "b1", "w2", "b2", "w3", "b3"}
    if set(params) != expected:
        raise NotImplementedError(
            f"fused kernel supports exactly 2 hidden layers; got params {sorted(params)}")

    B = observation.shape[0]
    w1 = params["w1"].astype(jnp.float32)          # [H1, Dx]  (torch Linear layout)
    w2 = params["w2"].astype(jnp.float32)          # [H2, H1]
    w3 = params["w3"].astype(jnp.float32)          # [R,  H2]
    H1, Dx = w1.shape
    H2 = w2.shape[0]
    R = w3.shape[0]
    b1 = params["b1"].astype(jnp.float32).reshape(H1, 1)
    b2 = params["b2"].astype(jnp.float32).reshape(H2, 1)
    b3 = params["b3"].astype(jnp.float32).reshape(R, 1)
    w3k = w3.T                                     # [H2, R] for the VPU head path

    din = observation.shape[-1] + action.shape[-1] + task.shape[-1]
    if din != Dx:
        raise ValueError(f"input feature dim {din} does not match w1's in-dim {Dx}")

    # Single fused wrapper layout op (concat + f32 cast + transpose) -> a
    # feature-major [Dx, B] operand so the streamed tile, both hidden tiles and
    # the output tile are all lane-dense.  (Check in a profile that this lowers
    # to a single fusion; it is the only wrapper-side HBM pass.)
    x_t = jnp.concatenate([observation, action, task], axis=-1).astype(jnp.float32).T

    # ---- batch tiling -------------------------------------------------------
    # Per-batch-element VMEM bytes of one grid step (f32, sublane-padded rows):
    # double-buffered streamed x + output tiles, plus the two hidden temporaries.
    elt_bytes = 4 * (2 * _round_up(Dx, 8)      # x tile   (double-buffered)
                     + 2 * _round_up(R, 8)     # out tile (double-buffered)
                     + _round_up(H1, 8)        # h1 temporary
                     + _round_up(H2, 8)        # h2 temporary
                     + _round_up(H1, 8))       # slack for pre-ReLU temporaries
    vmem_cap = _vmem_capacity_bytes()
    tb_cap = max(128, ((int(0.6 * vmem_cap) // elt_bytes) // 128) * 128)

    if B <= 256:
        tb = B                                  # single full block
    else:
        # 128-aligned tiles; guarantee >= 2 (and even) grid steps for v7x megacore.
        tb = max(128, min(block_b, tb_cap, _round_up(pl.cdiv(B, 2), 128)))
        n = pl.cdiv(B, tb)
        if n > 1 and n % 2 == 1:
            tb = max(128, min(tb, _round_up(pl.cdiv(B, n + 1), 128)))
    n_steps = pl.cdiv(B, tb)

    # Explicit VMEM limit: covers the tile footprint with headroom, stays under
    # ~85% of physical VMEM (v5e scoped default is 16 MiB; v7x physical is 64 MiB).
    vmem_limit = int(min(int(0.85 * vmem_cap), tb * elt_bytes + (32 << 20)))

    out_t = pl.pallas_call(
        _mlp_kernel,
        out_shape=jax.ShapeDtypeStruct((R, B), jnp.float32),
        grid=(n_steps,),
        in_specs=[
            pl.BlockSpec((Dx, tb), lambda i: (0, i)),      # streamed activations
            pl.BlockSpec(w1.shape, lambda i: (0, 0)),      # resident parameters
            pl.BlockSpec(b1.shape, lambda i: (0, 0)),
            pl.BlockSpec(w2.shape, lambda i: (0, 0)),
            pl.BlockSpec(b2.shape, lambda i: (0, 0)),
            pl.BlockSpec(w3k.shape, lambda i: (0, 0)),
            pl.BlockSpec(b3.shape, lambda i: (0, 0)),
        ],
        out_specs=pl.BlockSpec((R, tb), lambda i: (0, i)),
        compiler_params=pltpu.CompilerParams(
            dimension_semantics=("parallel",),             # both TCs on v7x
            vmem_limit_bytes=vmem_limit,
        ),
    )(x_t, w1, b1, w2, b2, w3k, b3)

    return out_t.T                                         # [B, reward_dim] float32


# -----------------------------------------------------------------------------
# Deterministic init mimicking the PyTorch __init__ (torch.nn.Linear layout):
#   hidden layers -> kaiming_normal_ (std = sqrt(2/fan_in)), bias = 0
#   final layer   -> xavier_uniform_ (bound = sqrt(6/(fan_in+fan_out))), bias = 0
# -----------------------------------------------------------------------------
def init_params(key, obs_dim, act_complex_dim, hidden_sizes, task_dim=1, reward_dim=1):
    sizes = [obs_dim + act_complex_dim + task_dim] + list(hidden_sizes)
    params = {}
    keys = jax.random.split(key, len(sizes))
    for i, (fan_in, fan_out) in enumerate(zip(sizes[:-1], sizes[1:])):
        std = (2.0 / fan_in) ** 0.5
        params[f"w{i + 1}"] = std * jax.random.normal(keys[i], (fan_out, fan_in), jnp.float32)
        params[f"b{i + 1}"] = jnp.zeros((fan_out,), jnp.float32)
    fan_in, fan_out = sizes[-1], reward_dim
    bound = (6.0 / (fan_in + fan_out)) ** 0.5
    n = len(hidden_sizes) + 1
    params[f"w{n}"] = jax.random.uniform(keys[-1], (fan_out, fan_in), jnp.float32,
                                         minval=-bound, maxval=bound)
    params[f"b{n}"] = jnp.zeros((fan_out,), jnp.float32)
    return params


# Pure-JAX reference of the same forward math (torch-layout params).
def _reference(observation, action, task, params):
    if task.ndim != observation.ndim:
        task = task[..., None]
    x = jnp.concatenate([observation, action, task], axis=-1).astype(jnp.float32)
    hp = jax.lax.Precision.HIGHEST
    h = jnp.maximum(jnp.dot(x, params["w1"].T, precision=hp) + params["b1"], 0.0)
    h = jnp.maximum(jnp.dot(h, params["w2"].T, precision=hp) + params["b2"], 0.0)
    return jnp.dot(h, params["w3"].T, precision=hp) + params["b3"]


if __name__ == "__main__":
    obs_dim, act_dim, task_dim, reward_dim = 4, 4, 1, 1
    hidden_sizes = [32, 32]

    key = jax.random.PRNGKey(0)
    (k_obs, k_act, k_task, k_param,
     k_obs2, k_act2, k_task2, k_obs3, k_act3, k_task3) = jax.random.split(key, 10)
    params = init_params(k_param, obs_dim, act_dim, hidden_sizes,
                         task_dim=task_dim, reward_dim=reward_dim)

    # --- tiny batch: single full block (grid=1).
    B = 8
    obs = jax.random.normal(k_obs, (B, obs_dim), jnp.float32)
    act = jax.random.normal(k_act, (B, act_dim), jnp.float32)
    task = jax.random.normal(k_task, (B,), jnp.float32)      # unsqueezed like torch

    out = reward_predictor_forward(obs, act, task, params)
    out = jax.block_until_ready(out)
    ref = _reference(obs, act, task, params)
    assert out.shape == (B, reward_dim)
    assert jnp.allclose(out, ref, atol=1e-4, rtol=1e-4)

    # --- mid batch: 2 grid steps (megacore split) + ragged partial last block.
    B2 = 300
    obs2 = jax.random.normal(k_obs2, (B2, obs_dim), jnp.float32)
    act2 = jax.random.normal(k_act2, (B2, act_dim), jnp.float32)
    task2 = jax.random.normal(k_task2, (B2,), jnp.float32)

    out2 = reward_predictor_forward(obs2, act2, task2, params)
    out2 = jax.block_until_ready(out2)
    ref2 = _reference(obs2, act2, task2, params)
    assert out2.shape == (B2, reward_dim)
    assert jnp.allclose(out2, ref2, atol=1e-4, rtol=1e-4)

    # --- larger batch with a small forced tile: multi-step grid + ragged tail.
    B3 = 1000
    obs3 = jax.random.normal(k_obs3, (B3, obs_dim), jnp.float32)
    act3 = jax.random.normal(k_act3, (B3, act_dim), jnp.float32)
    task3 = jax.random.normal(k_task3, (B3,), jnp.float32)

    out3 = reward_predictor_forward(obs3, act3, task3, params, block_b=256)
    out3 = jax.block_until_ready(out3)
    ref3 = _reference(obs3, act3, task3, params)
    assert out3.shape == (B3, reward_dim)
    assert jnp.allclose(out3, ref3, atol=1e-4, rtol=1e-4)

    print("KERNEL_OK")
</pallas_src>

<mosaic_0001>
module attributes {stable_mosaic.version = 11 : i64} {
  func.func @_mlp_kernel(%arg0: i32, %arg1: memref<9x8xf32, #tpu.memory_space<vmem>>, %arg2: memref<32x9xf32, #tpu.memory_space<vmem>>, %arg3: memref<32x1xf32, #tpu.memory_space<vmem>>, %arg4: memref<32x32xf32, #tpu.memory_space<vmem>>, %arg5: memref<32x1xf32, #tpu.memory_space<vmem>>, %arg6: memref<32x1xf32, #tpu.memory_space<vmem>>, %arg7: memref<1x1xf32, #tpu.memory_space<vmem>>, %arg8: memref<1x8xf32, #tpu.memory_space<vmem>>) attributes {dimension_semantics = [#tpu.dimension_semantics<parallel>], iteration_bounds = array<i64: 1>, scalar_prefetch = 0 : i64, scratch_operands = 0 : i64, tpu.core_type = #tpu.core_type<tc>, window_params = [{transform_indices = @transform_0, window_bounds = array<i64: 9, 8>}, {pipeline_mode = #tpu.pipeline_mode<synchronous>, transform_indices = @transform_1, window_bounds = array<i64: 32, 9>}, {pipeline_mode = #tpu.pipeline_mode<synchronous>, transform_indices = @transform_2, window_bounds = array<i64: 32, 1>}, {pipeline_mode = #tpu.pipeline_mode<synchronous>, transform_indices = @transform_3, window_bounds = array<i64: 32, 32>}, {pipeline_mode = #tpu.pipeline_mode<synchronous>, transform_indices = @transform_4, window_bounds = array<i64: 32, 1>}, {pipeline_mode = #tpu.pipeline_mode<synchronous>, transform_indices = @transform_5, window_bounds = array<i64: 32, 1>}, {pipeline_mode = #tpu.pipeline_mode<synchronous>, transform_indices = @transform_6, window_bounds = array<i64: 1, 1>}, {transform_indices = @transform_7, window_bounds = array<i64: 1, 8>}]} {
    %c0 = arith.constant 0 : index
    %c0_0 = arith.constant 0 : index
    %0 = vector.load %arg2[%c0, %c0_0] : memref<32x9xf32, #tpu.memory_space<vmem>>, vector<32x9xf32>
    %c0_1 = arith.constant 0 : index
    %c0_2 = arith.constant 0 : index
    %1 = vector.load %arg1[%c0_1, %c0_2] : memref<9x8xf32, #tpu.memory_space<vmem>>, vector<9x8xf32>
    %cst = arith.constant dense<0.000000e+00> : vector<32x8xf32>
    %2 = tpu.matmul %0, %1, %cst {dimension_numbers = #tpu.dot_dimension_numbers<[1], [0], [0], [1], [0, 0, 1, 1], [], []>} : vector<32x9xf32>, vector<9x8xf32>, vector<32x8xf32> -> vector<32x8xf32>
    %c0_3 = arith.constant 0 : index
    %c0_4 = arith.constant 0 : index
    %3 = vector.load %arg3[%c0_3, %c0_4] : memref<32x1xf32, #tpu.memory_space<vmem>>, vector<32x1xf32>
    %4 = vector.broadcast %3 : vector<32x1xf32> to vector<32x8xf32>
    %5 = arith.addf %2, %4 : vector<32x8xf32>
    %cst_5 = arith.constant 0.000000e+00 : f32
    %6 = vector.broadcast %cst_5 : f32 to vector<32x8xf32>
    %7 = arith.maximumf %5, %6 : vector<32x8xf32>
    %c0_6 = arith.constant 0 : index
    %c0_7 = arith.constant 0 : index
    %8 = vector.load %arg4[%c0_6, %c0_7] : memref<32x32xf32, #tpu.memory_space<vmem>>, vector<32x32xf32>
    %cst_8 = arith.constant dense<0.000000e+00> : vector<32x8xf32>
    %9 = tpu.matmul %8, %7, %cst_8 {dimension_numbers = #tpu.dot_dimension_numbers<[1], [0], [0], [1], [0, 0, 1, 1], [], []>} : vector<32x32xf32>, vector<32x8xf32>, vector<32x8xf32> -> vector<32x8xf32>
    %c0_9 = arith.constant 0 : index
    %c0_10 = arith.constant 0 : index
    %10 = vector.load %arg5[%c0_9, %c0_10] : memref<32x1xf32, #tpu.memory_space<vmem>>, vector<32x1xf32>
    %11 = vector.broadcast %10 : vector<32x1xf32> to vector<32x8xf32>
    %12 = arith.addf %9, %11 : vector<32x8xf32>
    %cst_11 = arith.constant 0.000000e+00 : f32
    %13 = vector.broadcast %cst_11 : f32 to vector<32x8xf32>
    %14 = arith.maximumf %12, %13 : vector<32x8xf32>
    %c0_12 = arith.constant 0 : index
    %c0_13 = arith.constant 0 : index
    %15 = vector.load %arg6[%c0_12, %c0_13] : memref<32x1xf32, #tpu.memory_space<vmem>>, vector<32x1xf32>
    %16 = vector.broadcast %15 : vector<32x1xf32> to vector<32x8xf32>
    %17 = arith.mulf %14, %16 : vector<32x8xf32>
    %cst_14 = arith.constant dense<0.000000e+00> : vector<8xf32>
    %18 = vector.multi_reduction <add>, %17, %cst_14 [0] : vector<32x8xf32> to vector<8xf32>
    %19 = vector.shape_cast %18 : vector<8xf32> to vector<1x8xf32>
    %c0_15 = arith.constant 0 : index
    %c0_16 = arith.constant 0 : index
    %20 = vector.load %arg7[%c0_15, %c0_16] : memref<1x1xf32, #tpu.memory_space<vmem>>, vector<1x1xf32>
    %21 = vector.broadcast %20 : vector<1x1xf32> to vector<1x8xf32>
    %22 = arith.addf %19, %21 : vector<1x8xf32>
    %c0_17 = arith.constant 0 : index
    %c0_18 = arith.constant 0 : index
    %23 = vector.load %arg8[%c0_17, %c0_18] : memref<1x8xf32, #tpu.memory_space<vmem>>, vector<1x8xf32>
    tpu.vector_store %arg8[%c0_17, %c0_18], %22 {strides = array<i32>} : memref<1x8xf32, #tpu.memory_space<vmem>>, vector<1x8xf32>,
    return
  }
  func.func @transform_0(%arg0: i32) -> (i32, i32) {
    %c0_i32 = arith.constant 0 : i32
    %c0_i32_0 = arith.constant 0 : i32
    return %c0_i32, %arg0 : i32, i32
  }
  func.func @transform_1(%arg0: i32) -> (i32, i32) {
    %c0_i32 = arith.constant 0 : i32
    %c0_i32_0 = arith.constant 0 : i32
    %c0_i32_1 = arith.constant 0 : i32
    return %c0_i32, %c0_i32_0 : i32, i32
  }
  func.func @transform_2(%arg0: i32) -> (i32, i32) {
    %c0_i32 = arith.constant 0 : i32
    %c0_i32_0 = arith.constant 0 : i32
    %c0_i32_1 = arith.constant 0 : i32
    return %c0_i32, %c0_i32_0 : i32, i32
  }
  func.func @transform_3(%arg0: i32) -> (i32, i32) {
    %c0_i32 = arith.constant 0 : i32
    %c0_i32_0 = arith.constant 0 : i32
    %c0_i32_1 = arith.constant 0 : i32
    return %c0_i32, %c0_i32_0 : i32, i32
  }
  func.func @transform_4(%arg0: i32) -> (i32, i32) {
    %c0_i32 = arith.constant 0 : i32
    %c0_i32_0 = arith.constant 0 : i32
    %c0_i32_1 = arith.constant 0 : i32
    return %c0_i32, %c0_i32_0 : i32, i32
  }
  func.func @transform_5(%arg0: i32) -> (i32, i32) {
    %c0_i32 = arith.constant 0 : i32
    %c0_i32_0 = arith.constant 0 : i32
    %c0_i32_1 = arith.constant 0 : i32
    return %c0_i32, %c0_i32_0 : i32, i32
  }
  func.func @transform_6(%arg0: i32) -> (i32, i32) {
    %c0_i32 = arith.constant 0 : i32
    %c0_i32_0 = arith.constant 0 : i32
    %c0_i32_1 = arith.constant 0 : i32
    return %c0_i32, %c0_i32_0 : i32, i32
  }
  func.func @transform_7(%arg0: i32) -> (i32, i32) {
    %c0_i32 = arith.constant 0 : i32
    %c0_i32_0 = arith.constant 0 : i32
    return %c0_i32, %arg0 : i32, i32
  }
}

</mosaic_0001>

<bundles_post_ra>
// kernel: reward_predictor_forward.1
= control target key start
LH: loop header
LB: loop body
LE: loop exit
PB: predicated region body
PF: predicated region fallthrough
CT: control target
= control target key end

     0   :  { %s590_s0 = inlined_call_operand.vmem [shape: f32[9,8], index: 0, kind: input, shape index: {}]   ;;  %s591_s1 = inlined_call_operand.vmem [shape: f32[32,9], index: 1, kind: input, shape index: {}]   ;;  %s592_s2 = inlined_call_operand.vmem [shape: f32[32,1], index: 2, kind: input, shape index: {}]   ;;  %s593_s3 = inlined_call_operand.vmem [shape: f32[32,32], index: 3, kind: input, shape index: {}]   ;;  %s594_s4 = inlined_call_operand.vmem [shape: f32[32,1], index: 4, kind: input, shape index: {}]   ;;  %s595_s5 = inlined_call_operand.vmem [shape: f32[32,1], index: 5, kind: input, shape index: {}]   ;;  %s596_s6 = inlined_call_operand.<no memory space> [shape: f32[1,1], index: 6, kind: input, shape index: {}]   ;;  %s597_s7 = inlined_call_operand.hbm [shape: f32[1,8], index: 7, kind: output, shape index: {}]  }
   0x1   :  { %v12_v0 = vstv %s596_s6 }
   0x2   :  { %13 = vst [vmem:[#allocation2] sm:$0x1] %v12_v0 }
   0x3   :  { %v33_v1 = vld [vmem:[%s590_s0] sm:$0xff]  ;;  %v34_v2 = vld [vmem:[%s590_s0 + $0x8] sm:$0x1]  ;;  %vm72_vm0 = vcmask 1040384   ;;  %vm454_vm1 = vmmov 1   ;;  %vm59_vm3 = vcmask 72704  }
   0x4   :  { %v29_v3 = vld [vmem:[%s591_s1] sm:$0xff]  ;;  %v411_v4 = vpack.c.bf16 %v34_v2, %v33_v1  ;;  %vm412_vm2 = vmpackc.low %vm72_vm0, %vm454_vm1  ;;  %v455_v5 = vmov 0   ;;  %v37_v7 = vld [vmem:[%s592_s2 + $0x10] sm:$0xff] }
   0x5   :  { %391 = vmatprep.mubr.msk.f32.mxu0 %vm59_vm3, %v29_v3  ;;  %428 = vset.pattern.permute.xlu0 %v455_v5  ;;  %v35_v6 = vld [vmem:[%s592_s2] sm:$0xff]  ;;  %v30_v8 = vld [vmem:[%s591_s1 + $0x8] sm:$0xff]  ;;  %v31_v10 = vld [vmem:[%s591_s1 + $0x10] sm:$0xff] }
   0x6   :  { %413 = vmatprep.subr.msk.bf16.mxu0 %vm412_vm2, %v411_v4  ;;  %41 = vperm.xlu0 %428, %v35_v6   ;;  %v36_v9 = vld [vmem:[%s592_s2 + $0x8] sm:$0xff]  ;;  %v38_v11 = vld [vmem:[%s592_s2 + $0x18] sm:$0xff] }
   0x7   :  { %416 = vmatpush3.bf16.msk.msra.mxu0 %vm412_vm2, %v411_v4  ;;  %429 = vset.pattern.permute.xlu1 %v455_v5 }
   0x8   :  { %51 = vperm.xlu1 %429, %v37_v7  }
   0x9   :  { %14 = vsyncpa [#allocation4], 0  ;;  %v32_v12 = vld [vmem:[%s591_s1 + $0x18] sm:$0xff]  ;;  %v169_v13 = vld [vmem:[%s594_s4] sm:$0xff]  ;;  %vm193_vm4 = vcmask 261120   ;;  %vm323_vm5 = vcmask 64512  }
   0xa   :  { %392 = vmatmul.mubr.msk.f32.vlgmr.msra.gmra.mrb[0].mxu0 %vm59_vm3, %v30_v8  ;;  %46 = vperm.xlu0 %428, %v36_v9   ;;  %v170_v14 = vld [vmem:[%s594_s4 + $0x8] sm:$0xff]  ;;  %v171_v15 = vld [vmem:[%s594_s4 + $0x10] sm:$0xff]  ;;  %v172_v16 = vld [vmem:[%s594_s4 + $0x18] sm:$0xff]  ;;  %vm348_vm6 = vcmask 57344  }
   0xb   :  { %394 = vmatprep.mubr.msk.f32.mxu0 %vm59_vm3, %v31_v10  ;;  %v295_v17 = vld [vmem:[%s595_s5] sm:$0xff]  ;;  %v296_v18 = vld [vmem:[%s595_s5 + $0x8] sm:$0xff]  ;;  %v297_v19 = vld [vmem:[%s595_s5 + $0x10] sm:$0xff]  ;;  %v343_v10 = vlaneseq }
   0xc   :  { %56 = vperm.xlu1 %429, %v38_v11   ;;  %v298_v20 = vld [vmem:[%s595_s5 + $0x18] sm:$0xff]  ;;  %v337_v21 = vld [vmem:[#allocation2] sm:$0x1]  ;;  %v166_v41 = vld [vmem:[%s593_s3 + $0x8] sm:$0xff] }
   0xd   :  { %v165_v22 = vld [vmem:[%s593_s3] sm:$0xff]  ;;  %v167_v42 = vld [vmem:[%s593_s3 + $0x10] sm:$0xff]  ;;  %v168_v43 = vld [vmem:[%s593_s3 + $0x18] sm:$0xff]  ;;  %s456_s3 = smov [#allocation3]  }
   0xe   :  { %395 = vmatmul.mubr.msk.f32.gmra.mrb[2].mxu0 %vm59_vm3, %v32_v12  ;;  %175 = vperm.xlu0 %428, %v169_v13   ;;  %v344_v13 = vshrl.u32 %v343_v10, 7  ;;  %s356_s16 = sshll.u32 %s456_s3, 4  ;;  %s357_s16 = int_to_ptr.vmem [resolvable:$true] %s356_s16 }
   0xf   :  { %405 = vmatprep.mubr.msk.f32.mxu1 %vm193_vm4, %v165_v22  ;;  %s430_s17 = scalar_lea.vmem %s357_s16, 16  ;;  %s434_s18 = scalar_lea.vmem %s357_s16, 32 }
  0x10   :  { %180 = vperm.xlu1 %429, %v170_v14   ;;  %p431_p0 = scmp.ne.s32.totalorder %s357_s16, %s430_s17  ;;  %p435_p1 = scmp.lt.s32.totalorder %s357_s16, %s357_s16 }
  0x11   :  { %p436_p2 = scmp.lt.s32.totalorder %s434_s18, %s430_s17 }
  0x12   :  { %185 = vperm.xlu0 %428, %v171_v15  }
  0x13   :  { %p437_p3 = por %p436_p2, %p435_p1 }
  0x14   :  { %190 = vperm.xlu1 %429, %v172_v16   ;;  %v345_v16 = vsub.s32 0, %v344_v13 }
  0x15   :  { %p438_p4 = pnand %p437_p3, %p431_p0 }
  0x16   :  { %301 = vperm.xlu0 %428, %v295_v17  }
  0x18   :  { %306 = vperm.xlu1 %429, %v296_v18  }
  0x1a   :  { %311 = vperm.xlu0 %428, %v297_v19  }
  0x1c   :  { %316 = vperm.xlu1 %429, %v298_v20  }
  0x1e   :  { %340 = vperm.xlu0 %428, %v337_v21  }
  0x85   :  { %v42_v23 = vpop.permute.xlu0 %41 }
  0x87   :  { %v52_v24 = vpop.permute.xlu1 %51 }
  0x89   :  { %v47_v25 = vpop.permute.xlu0 %46 }
  0x8b   :  { %v57_v31 = vpop.permute.xlu1 %56 }
  0x8d   :  { %v176_v44 = vpop.permute.xlu0 %175 }
  0x8f   :  { %v181_v45 = vpop.permute.xlu1 %180 }
  0x91   :  { %v186_v46 = vpop.permute.xlu0 %185 }
  0x93   :  { %v191_v47 = vpop.permute.xlu1 %190 }
  0x95   :  { %v302_v52 = vpop.permute.xlu0 %301 }
  0x97   :  { %v307_v53 = vpop.permute.xlu1 %306 }
  0x99   :  { %v312_v2 = vpop.permute.xlu0 %311 }
  0x9b   :  { %v317_v3 = vpop.permute.xlu1 %316 }
  0x9d   :  { %v341_v18 = vpop.permute.xlu0 %340 }
  0x9e   :  { %v346_v20 = vrot.slane %v341_v18, %v345_v16 }
  0xdd   :  { %v393_v26 = vpop.f32.mrb[0].mxu0 }
  0xde   :  { %v148_v27 = vadd.f32 %v393_v26, %v47_v25  ;;  %v142_v28 = vpop.f32.mrb[1].mxu0 }
  0xdf   :  { %v143_v29 = vadd.f32 %v142_v28, %v42_v23 }
  0xe0   :  { %v162_v30 = vmax.f32 %v148_v27, 0.0 }
  0xe1   :  { %v161_v32 = vmax.f32 %v143_v29, 0.0  ;;  %v396_v33 = vpop.f32.mrb[2].mxu0 }
  0xe2   :  { %v158_v34 = vadd.f32 %v396_v33, %v57_v31  ;;  %v152_v35 = vpop.f32.mrb[3].mxu0 }
  0xe3   :  { %v153_v36 = vadd.f32 %v152_v35, %v52_v24  ;;  %v417_v37 = vpack.c.bf16 %v162_v30, %v161_v32 }
  0xe4   :  { %v164_v38 = vmax.f32 %v158_v34, 0.0 }
  0xe5   :  { %v163_v39 = vmax.f32 %v153_v36, 0.0  ;;  %418 = vmatprep.subr.bf16.mxu1 %v417_v37 }
  0xe6   :  { %420 = vmatpush3.bf16.msra.mxu1 %v417_v37 }
  0xe7   :  { %v421_v40 = vpack.c.bf16 %v164_v38, %v163_v39 }
  0xe9   :  { %422 = vmatprep.subr.bf16.mxu1 %v421_v40 }
  0xea   :  { %424 = vmatpush3.bf16.msra.mxu1 %v421_v40 }
  0xed   :  { %406 = vmatmul.mubr.msk.f32.vlgmr.msra.gmra.mrb[0].mxu1 %vm193_vm4, %v166_v41 }
  0xee   :  { %408 = vmatprep.mubr.msk.f32.mxu1 %vm193_vm4, %v167_v42 }
  0xf1   :  { %409 = vmatmul.mubr.msk.f32.gmra.mrb[2].mxu1 %vm193_vm4, %v168_v43 }
 0x1c0   :  { %v407_v48 = vpop.f32.mrb[0].mxu1 }
 0x1c1   :  { %v278_v49 = vadd.f32 %v407_v48, %v181_v45  ;;  %v272_v50 = vpop.f32.mrb[1].mxu1 }
 0x1c2   :  { %v273_v51 = vadd.f32 %v272_v50, %v176_v44 }
 0x1c3   :  { %v292_v54 = vmax.f32 %v278_v49, 0.0 }
 0x1c4   :  { %v291_v55 = vmax.f32 %v273_v51, 0.0  ;;  %v410_v56 = vpop.f32.mrb[2].mxu1 }
 0x1c5   :  { %v320_v57 = vmul.f32 %v307_v53, %v292_v54  ;;  %v288_v58 = vadd.f32 %v410_v56, %v191_v47  ;;  %v282_v59 = vpop.f32.mrb[3].mxu1 }
 0x1c6   :  { %v319_v60 = vmul.f32 %v302_v52, %v291_v55  ;;  %v283_v61 = vadd.f32 %v282_v59, %v186_v46 }
 0x1c7   :  { %v325_v62 = vsel %vm323_vm5, %v320_v57, 0.0  ;;  %v294_v63 = vmax.f32 %v288_v58, 0.0 }
 0x1c8   :  { %v324_v0 = vsel %vm323_vm5, %v319_v60, 0.0  ;;  %v293_v1 = vmax.f32 %v283_v61, 0.0 }
 0x1c9   :  { %v326_v4 = vadd.f32 %v325_v62, %v324_v0  ;;  %v322_v5 = vmul.f32 %v317_v3, %v294_v63 }
 0x1ca   :  { %v321_v6 = vmul.f32 %v312_v2, %v293_v1 }
 0x1cb   :  { %v329_v9 = vsel %vm323_vm5, %v322_v5, 0.0 }
 0x1cc   :  { %v327_v7 = vsel %vm323_vm5, %v321_v6, 0.0 }
 0x1cd   :  { %v328_v8 = vadd.f32 %v327_v7, %v326_v4 }
 0x1cf   :  { %v330_v11 = vadd.f32 %v329_v9, %v328_v8 }
 0x1d1   :  { %v331_v12 = vrot.slane %v330_v11, 4 }
 0x1d3   :  { %v332_v14 = vadd.f32 %v331_v12, %v330_v11 }
 0x1d5   :  { %v333_v15 = vrot.slane %v332_v14, 2 }
 0x1d7   :  { %v334_v17 = vadd.f32 %v333_v15, %v332_v14 }
 0x1d9   :  { %v335_v19 = vrot.slane %v334_v17, 1 }
 0x1db   :  { %v336_v21 = vadd.f32 %v335_v19, %v334_v17 }
 0x1dd   :  { %v347_v22 = vadd.f32 %v346_v20, %v336_v21 }
 0x1df   :  { %349 = vst.msk [vmem:[#allocation3] sm:$0x1] %vm348_vm6, %v347_v22 }
 0x1e0   :  { %441 = shalt.err (!%p438_p4)
}
 0x1e1   :  { %s442_s21 = scalar_lea.hbm %s597_s7, 16 }
 0x1e2   :  { %p443_p5 = scmp.ne.s32.totalorder %s597_s7, %s442_s21  ;;  %p446_p6 = scmp.lt.u32.totalorder %s442_s21, %s597_s7 }
 0x1e4   :  { %p448_p7 = pnand %p446_p6, %p443_p5 }
 0x1e6   :  { %451 = shalt.err (!%p448_p7)
}
 0x1e7   :  { %359 = dma.vmem_to_hbm [thread:$0]  %s357_s16, 16, %s597_s7, [#allocation4]  }
 0x1e8   :  { %452 = dma.done.wait [#allocation4], 16  }
 0x1e9   :  { %453 = vsyncadd [#allocation4], 4294967280 }
 0x1ea   :  { %363 = vsyncpa [#allocation4], 1 }

</bundles_post_ra>
